<compile_context>
chip_gen: v6e
topology: v6e:2x2x1
jax: 0.10.0
libtpu: 0.0.40
codegen_flags: <defaults>
</compile_context>

<pallas_src>
import functools

import jax
import jax.numpy as jnp
from jax import lax
from jax.experimental import pallas as pl
from jax.experimental.pallas import tpu as pltpu

EPS = 1e-8
_TARGET_TILE_BYTES = 2 * 1024 * 1024  # ~1-4 MiB blocks reach ~85% of HBM roofline


def _vmem_budget_bytes():
    """Scoped-VMEM budget, generation aware (v5e/v6e: 128 MiB, v7x: 64 MiB)."""
    cap = 128 * 1024 * 1024
    try:
        cap = int(getattr(pltpu.get_tpu_info(), "vmem_capacity_bytes", cap))
    except Exception:
        pass
    # 3/8 of physical VMEM: 48 MiB on v5e/v6e, 24 MiB on v7x.
    return int(min(48 * 1024 * 1024, cap * 3 // 8))


# ----------------------------------------------------------------------------
# Fused single-pass kernel: whole sample resident in VMEM.
# ----------------------------------------------------------------------------
def _fused_kernel(g_ref, b_ref, a_ref, x_ref, o_ref, *, inv_count):
    """GroupNorm(1) + PReLU on one full sample. x/o: (rows, cols); params: (rows, 1)."""
    x = x_ref[...].astype(jnp.float32)                       # (rows, cols)
    mean = jnp.sum(x) * inv_count
    xc = x - mean
    var = jnp.sum(xc * xc) * inv_count                       # exact centered variance
    inv_std = lax.rsqrt(var + EPS)
    scale = g_ref[...].astype(jnp.float32) * inv_std          # (rows, 1)
    y = xc * scale + b_ref[...].astype(jnp.float32)
    out = y * jnp.where(y > 0, jnp.float32(1.0), a_ref[...].astype(jnp.float32))
    o_ref[...] = out.astype(o_ref.dtype)


# ----------------------------------------------------------------------------
# Tiled two-pass fallback (sample too large for VMEM).
# ----------------------------------------------------------------------------
def _stats_kernel(x_ref, sum_ref, sumsq_ref, *, extent, tile, mask_axis):
    """Accumulate per-sample sum / sum-of-squares over tiles (reduction axis = grid 1)."""
    t = pl.program_id(1)

    @pl.when(t == 0)
    def _():
        sum_ref[...] = jnp.zeros_like(sum_ref)
        sumsq_ref[...] = jnp.zeros_like(sumsq_ref)

    x = x_ref[...].astype(jnp.float32)
    if extent % tile != 0:
        # ragged tail tile: zero out elements past the true extent along mask_axis
        idx = lax.broadcasted_iota(jnp.int32, x.shape, dimension=mask_axis)
        x = jnp.where(t * tile + idx < extent, x, 0.0)

    sum_ref[...] += jnp.sum(x)
    sumsq_ref[...] += jnp.sum(x * x)


def _apply_kernel(sum_ref, sumsq_ref, g_ref, b_ref, a_ref, x_ref, o_ref, *, inv_count):
    """Normalize + per-row affine + PReLU on one tile (fallback path)."""
    mean = sum_ref[...] * inv_count                          # (1, 1)
    # NOTE: single-pass E[x^2]-mean^2 form (guarded); only used when a sample
    # is too large for the fused (exactly-centered) path.
    var = jnp.maximum(sumsq_ref[...] * inv_count - mean * mean, 0.0)
    inv_std = lax.rsqrt(var + EPS)
    scale = g_ref[...].astype(jnp.float32) * inv_std          # (rows_blk, 1)
    shift = b_ref[...].astype(jnp.float32) - mean * scale
    x = x_ref[...].astype(jnp.float32)
    y = x * scale + shift
    out = y * jnp.where(y > 0, jnp.float32(1.0), a_ref[...].astype(jnp.float32))
    # Ragged tail blocks compute on unspecified out-of-bounds data; Pallas drops
    # the out-of-bounds stores, so only in-range elements are written.
    o_ref[...] = out.astype(o_ref.dtype)


# ----------------------------------------------------------------------------
# Wrapper
# ----------------------------------------------------------------------------
def norm_act(x, gamma, beta, alpha):
    """x: (N, C, H, W); gamma/beta/alpha: (C,). GroupNorm(1, C, eps=1e-8) + PReLU(C)."""
    N, C, H, W = x.shape
    HW = H * W
    inv_count = 1.0 / float(C * HW)
    vmem_limit = _vmem_budget_bytes()

    # ---- layout: keep vregs sublane/lane dense whenever possible -----------
    if HW % 128 == 0:
        # (C, HW) -> (C * HW/128, 128): dense sublanes even for tiny C; channel
        # params are repeated per 128-lane row (row r -> channel r // (HW/128)).
        rep = HW // 128
        rows, cols = C * rep, 128
        g2 = jnp.repeat(gamma.astype(jnp.float32), rep).reshape(rows, 1)
        b2 = jnp.repeat(beta.astype(jnp.float32), rep).reshape(rows, 1)
        a2 = jnp.repeat(alpha.astype(jnp.float32), rep).reshape(rows, 1)
        tiled_axis = 0  # fallback tiles over rows (sublanes)
    else:
        rows, cols = C, HW
        g2 = gamma.astype(jnp.float32).reshape(rows, 1)
        b2 = beta.astype(jnp.float32).reshape(rows, 1)
        a2 = alpha.astype(jnp.float32).reshape(rows, 1)
        tiled_axis = 1  # fallback tiles over HW (lanes)

    x3 = x.reshape(N, rows, cols)
    slab_bytes = rows * cols * 4

    # ---- fused single pass: one HBM read + one HBM write per element -------
    # Budget: in + out double-buffered (4x) + f32 temporaries (~2x) per sample.
    if 6 * slab_bytes <= vmem_limit:
        out3 = pl.pallas_call(
            functools.partial(_fused_kernel, inv_count=inv_count),
            out_shape=jax.ShapeDtypeStruct((N, rows, cols), x.dtype),
            grid=(N,),
            in_specs=[pl.BlockSpec((rows, 1), lambda n: (0, 0)),
                      pl.BlockSpec((rows, 1), lambda n: (0, 0)),
                      pl.BlockSpec((rows, 1), lambda n: (0, 0)),
                      pl.BlockSpec((None, rows, cols), lambda n: (n, 0, 0))],
            out_specs=pl.BlockSpec((None, rows, cols), lambda n: (n, 0, 0)),
            compiler_params=pltpu.CompilerParams(
                dimension_semantics=("parallel",),
                vmem_limit_bytes=vmem_limit),
        )(g2, b2, a2, x3)
        return out3.reshape(N, C, H, W)

    # ---- tiled two-pass fallback --------------------------------------------
    # Tile sized by bytes: ~2 MiB target, clamped so ~6x tile_bytes fits VMEM.
    block_budget = max(8 * 128 * 4, min(_TARGET_TILE_BYTES, vmem_limit // 6))
    if tiled_axis == 0:
        tile = max(8, (block_budget // (cols * 4)) // 8 * 8)
        if tile >= rows:
            tile = rows
        x_spec = pl.BlockSpec((None, tile, cols), lambda n, t: (n, t, 0))
        p_spec = pl.BlockSpec((tile, 1), lambda n, t: (t, 0))
        extent = rows
    else:
        tile = max(128, (block_budget // (rows * 4)) // 128 * 128)
        if tile >= cols:
            tile = cols
        x_spec = pl.BlockSpec((None, rows, tile), lambda n, t: (n, 0, t))
        p_spec = pl.BlockSpec((rows, 1), lambda n, t: (0, 0))
        extent = cols

    num_t = pl.cdiv(extent, tile)
    stat_spec = pl.BlockSpec((None, 1, 1), lambda n, t: (n, 0, 0))
    stat_shape = jax.ShapeDtypeStruct((N, 1, 1), jnp.float32)

    # Pass 1: per-sample sum / sum-of-squares (N parallel, tile axis = reduction).
    sum_x, sum_xx = pl.pallas_call(
        functools.partial(_stats_kernel, extent=extent, tile=tile,
                          mask_axis=tiled_axis),
        out_shape=(stat_shape, stat_shape),
        grid=(N, num_t),
        in_specs=[x_spec],
        out_specs=(stat_spec, stat_spec),
        compiler_params=pltpu.CompilerParams(
            dimension_semantics=("parallel", "arbitrary"),
            vmem_limit_bytes=vmem_limit),
    )(x3)

    # Pass 2: normalize + affine + PReLU, tile by tile (fully parallel grid).
    out3 = pl.pallas_call(
        functools.partial(_apply_kernel, inv_count=inv_count),
        out_shape=jax.ShapeDtypeStruct((N, rows, cols), x.dtype),
        grid=(N, num_t),
        in_specs=[stat_spec, stat_spec, p_spec, p_spec, p_spec, x_spec],
        out_specs=x_spec,
        compiler_params=pltpu.CompilerParams(
            dimension_semantics=("parallel", "parallel"),
            vmem_limit_bytes=vmem_limit),
    )(sum_x, sum_xx, g2, b2, a2, x3)

    return out3.reshape(N, C, H, W)


def norm_act_ref(x, gamma, beta, alpha):
    """Pure-JAX reference of GroupNorm(1, C, eps=1e-8) + PReLU(C)."""
    N, C, H, W = x.shape
    xf = x.astype(jnp.float32).reshape(N, -1)
    mean = xf.mean(axis=1, keepdims=True)
    var = ((xf - mean) ** 2).mean(axis=1, keepdims=True)
    xn = ((xf - mean) / jnp.sqrt(var + EPS)).reshape(N, C, H, W)
    y = xn * gamma[None, :, None, None] + beta[None, :, None, None]
    return jnp.where(y > 0, y, alpha[None, :, None, None] * y).astype(x.dtype)


if __name__ == "__main__":
    key = jax.random.PRNGKey(0)
    kx, kg, kb, kx2 = jax.random.split(key, 4)

    # Primary shape (HW multiple of 128 -> dense rows layout, fused path).
    N, C, H, W = 2, 4, 16, 16
    x = jax.random.normal(kx, (N, C, H, W), dtype=jnp.float32)
    gamma = 1.0 + 0.1 * jax.random.normal(kg, (C,), dtype=jnp.float32)
    beta = 0.1 * jax.random.normal(kb, (C,), dtype=jnp.float32)
    alpha = jnp.full((C,), 0.25, dtype=jnp.float32)  # PyTorch PReLU default

    out = norm_act(x, gamma, beta, alpha)
    jax.block_until_ready(out)
    ref = norm_act_ref(x, gamma, beta, alpha)
    assert jnp.allclose(out, ref, atol=1e-5, rtol=1e-5), "mismatch vs reference (dense layout)"

    # Secondary shape (HW NOT a multiple of 128 -> (C, HW) layout, fused path).
    x_odd = jax.random.normal(kx2, (N, C, 9, 9), dtype=jnp.float32)
    out_odd = norm_act(x_odd, gamma, beta, alpha)
    jax.block_until_ready(out_odd)
    ref_odd = norm_act_ref(x_odd, gamma, beta, alpha)
    assert jnp.allclose(out_odd, ref_odd, atol=1e-5, rtol=1e-5), "mismatch vs reference (odd HW)"

    print("KERNEL_OK")
</pallas_src>

<mosaic_0001>
module attributes {stable_mosaic.version = 11 : i64} {
  func.func @_fused_kernel(%arg0: i32, %arg1: memref<8x1xf32, #tpu.memory_space<vmem>>, %arg2: memref<8x1xf32, #tpu.memory_space<vmem>>, %arg3: memref<8x1xf32, #tpu.memory_space<vmem>>, %arg4: memref<1x8x128xf32, #tpu.memory_space<vmem>>, %arg5: memref<1x8x128xf32, #tpu.memory_space<vmem>>) attributes {dimension_semantics = [#tpu.dimension_semantics<parallel>], iteration_bounds = array<i64: 2>, scalar_prefetch = 0 : i64, scratch_operands = 0 : i64, tpu.core_type = #tpu.core_type<tc>, window_params = [{pipeline_mode = #tpu.pipeline_mode<synchronous>, transform_indices = @transform_0, window_bounds = array<i64: 8, 1>}, {pipeline_mode = #tpu.pipeline_mode<synchronous>, transform_indices = @transform_1, window_bounds = array<i64: 8, 1>}, {pipeline_mode = #tpu.pipeline_mode<synchronous>, transform_indices = @transform_2, window_bounds = array<i64: 8, 1>}, {transform_indices = @transform_3, window_bounds = array<i64: 1, 8, 128>}, {transform_indices = @transform_4, window_bounds = array<i64: 1, 8, 128>}]} {
    %c0 = arith.constant 0 : index
    %c0_0 = arith.constant 0 : index
    %c0_1 = arith.constant 0 : index
    %0 = vector.load %arg4[%c0, %c0_0, %c0_1] : memref<1x8x128xf32, #tpu.memory_space<vmem>>, vector<1x8x128xf32>
    %1 = vector.shape_cast %0 : vector<1x8x128xf32> to vector<8x128xf32>
    %2 = vector.shape_cast %1 : vector<8x128xf32> to vector<1x8x128xf32>
    %cst = arith.constant dense<0.000000e+00> : vector<1xf32>
    %3 = vector.multi_reduction <add>, %2, %cst [1, 2] : vector<1x8x128xf32> to vector<1xf32>
    %4 = vector.shape_cast %3 : vector<1xf32> to vector<1x1x1xf32>
    %5 = vector.extract %4[0, 0, 0] : f32 from vector<1x1x1xf32>
    %cst_2 = arith.constant 9.765625E-4 : f32
    %6 = arith.mulf %5, %cst_2 : f32
    %7 = vector.broadcast %6 : f32 to vector<8x128xf32>
    %8 = arith.subf %1, %7 : vector<8x128xf32>
    %9 = arith.mulf %8, %8 : vector<8x128xf32>
    %10 = vector.shape_cast %9 : vector<8x128xf32> to vector<1x8x128xf32>
    %cst_3 = arith.constant dense<0.000000e+00> : vector<1xf32>
    %11 = vector.multi_reduction <add>, %10, %cst_3 [1, 2] : vector<1x8x128xf32> to vector<1xf32>
    %12 = vector.shape_cast %11 : vector<1xf32> to vector<1x1x1xf32>
    %13 = vector.extract %12[0, 0, 0] : f32 from vector<1x1x1xf32>
    %cst_4 = arith.constant 9.765625E-4 : f32
    %14 = arith.mulf %13, %cst_4 : f32
    %cst_5 = arith.constant 9.99999993E-9 : f32
    %15 = arith.addf %14, %cst_5 : f32
    %16 = math.rsqrt %15 : f32
    %c0_6 = arith.constant 0 : index
    %c0_7 = arith.constant 0 : index
    %17 = vector.load %arg1[%c0_6, %c0_7] : memref<8x1xf32, #tpu.memory_space<vmem>>, vector<8x1xf32>
    %18 = vector.broadcast %16 : f32 to vector<8x1xf32>
    %19 = arith.mulf %17, %18 : vector<8x1xf32>
    %20 = vector.broadcast %19 : vector<8x1xf32> to vector<8x128xf32>
    %21 = arith.mulf %8, %20 : vector<8x128xf32>
    %c0_8 = arith.constant 0 : index
    %c0_9 = arith.constant 0 : index
    %22 = vector.load %arg2[%c0_8, %c0_9] : memref<8x1xf32, #tpu.memory_space<vmem>>, vector<8x1xf32>
    %23 = vector.broadcast %22 : vector<8x1xf32> to vector<8x128xf32>
    %24 = arith.addf %21, %23 : vector<8x128xf32>
    %cst_10 = arith.constant 0.000000e+00 : f32
    %25 = vector.broadcast %cst_10 : f32 to vector<8x128xf32>
    %26 = arith.cmpf ogt, %24, %25 : vector<8x128xf32>
    %c0_11 = arith.constant 0 : index
    %c0_12 = arith.constant 0 : index
    %27 = vector.load %arg3[%c0_11, %c0_12] : memref<8x1xf32, #tpu.memory_space<vmem>>, vector<8x1xf32>
    %cst_13 = arith.constant 1.000000e+00 : f32
    %28 = vector.broadcast %cst_13 : f32 to vector<8x128xf32>
    %29 = vector.shape_cast %27 : vector<8x1xf32> to vector<8x1xf32>
    %30 = vector.broadcast %29 : vector<8x1xf32> to vector<8x128xf32>
    %31 = arith.select %26, %28, %30 : vector<8x128xi1>, vector<8x128xf32>
    %32 = arith.mulf %24, %31 : vector<8x128xf32>
    %c0_14 = arith.constant 0 : index
    %c0_15 = arith.constant 0 : index
    %c0_16 = arith.constant 0 : index
    %33 = vector.load %arg5[%c0_14, %c0_15, %c0_16] : memref<1x8x128xf32, #tpu.memory_space<vmem>>, vector<1x8x128xf32>
    %34 = vector.shape_cast %33 : vector<1x8x128xf32> to vector<8x128xf32>
    %35 = vector.shape_cast %32 : vector<8x128xf32> to vector<1x8x128xf32>
    tpu.vector_store %arg5[%c0_14, %c0_15, %c0_16], %35 {strides = array<i32>} : memref<1x8x128xf32, #tpu.memory_space<vmem>>, vector<1x8x128xf32>,
    return
  }
  func.func @transform_0(%arg0: i32) -> (i32, i32) {
    %c0_i32 = arith.constant 0 : i32
    %c0_i32_0 = arith.constant 0 : i32
    %c0_i32_1 = arith.constant 0 : i32
    return %c0_i32, %c0_i32_0 : i32, i32
  }
  func.func @transform_1(%arg0: i32) -> (i32, i32) {
    %c0_i32 = arith.constant 0 : i32
    %c0_i32_0 = arith.constant 0 : i32
    %c0_i32_1 = arith.constant 0 : i32
    return %c0_i32, %c0_i32_0 : i32, i32
  }
  func.func @transform_2(%arg0: i32) -> (i32, i32) {
    %c0_i32 = arith.constant 0 : i32
    %c0_i32_0 = arith.constant 0 : i32
    %c0_i32_1 = arith.constant 0 : i32
    return %c0_i32, %c0_i32_0 : i32, i32
  }
  func.func @transform_3(%arg0: i32) -> (i32, i32, i32) {
    %c0_i32 = arith.constant 0 : i32
    %c0_i32_0 = arith.constant 0 : i32
    %c0_i32_1 = arith.constant 0 : i32
    return %arg0, %c0_i32, %c0_i32_0 : i32, i32, i32
  }
  func.func @transform_4(%arg0: i32) -> (i32, i32, i32) {
    %c0_i32 = arith.constant 0 : i32
    %c0_i32_0 = arith.constant 0 : i32
    %c0_i32_1 = arith.constant 0 : i32
    return %arg0, %c0_i32, %c0_i32_0 : i32, i32, i32
  }
}

</mosaic_0001>

<bundles_post_ra>
// kernel: tpu_custom_call.1
= control target key start
LH: loop header
LB: loop body
LE: loop exit
PB: predicated region body
PF: predicated region fallthrough
CT: control target
= control target key end

     0   :  { %9 = vsyncpa [#allocation3], 0  ;;  %s565_s0 = inlined_call_operand.vmem [shape: f32[8,1], index: 0, kind: input, shape index: {}]   ;;  %s566_s1 = inlined_call_operand.vmem [shape: f32[8,1], index: 1, kind: input, shape index: {}]   ;;  %s567_s2 = inlined_call_operand.vmem [shape: f32[8,1], index: 2, kind: input, shape index: {}]   ;;  %s568_s3 = inlined_call_operand.vmem [shape: f32[2,8,128], index: 3, kind: input, shape index: {}]   ;;  %s569_s4 = inlined_call_operand.hbm [shape: f32[2,8,128], index: 4, kind: output, shape index: {}]  }
   0x1   :  { %11 = vsyncpa [#allocation3 + $0x1], 0  ;;  %s469_s15 = smov 0   ;;  %s471_s16 = smov 0  }
   0x2   :  { %s473_s17 = smov 0   ;;  %s475_s18 = smov 0  }
   0x3 LB: > { %s490_s19 = sadd.s32 4294967295, %s440_s18   ;;  %s320_s20 = sadd.s32 4294967294, %s440_s18   ;;  %s440_s18 = sphi %s475_s18, %s575_s18   ;;  %s436_s17 = sphi %s473_s17, %s574_s17   ;;  %s432_s16 = sphi %s471_s16, %s573_s16   ;;  %s428_s15 = sphi %s469_s15, %s572_s15  }
   0x4   : > { %s494_s21 = sadd.s32 1, %s440_s18   ;;  %s113_s22 = sadd.s32 1, %s436_s17 }
   0x5   : > { %s110_s23 = ssub.s32 %s440_s18, %s494_s21  ;;  %p123_p0 = scmp.ne.s32.totalorder %s436_s17, %s432_s16 }
   0x6   : > { %p111_p1 = scmp.eq.s32.totalorder %s110_s23, 0  ;;  %p124_p2 = scmp.eq.s32.totalorder %s490_s19, 1 }
   0x7   : > { %p129_p3 = scmp.ne.s32.totalorder %s432_s16, %s428_s15  ;;  %p130_p4 = scmp.eq.s32.totalorder %s320_s20, 1 }
   0x8   : > { %s505_s24 = scalar_select %p111_p1, %s436_s17, %s113_s22  }
   0x9   : > { %p507_p5 = por %p124_p2, %p123_p0  ;;  %p511_p6 = por %p130_p4, %p129_p3 }
   0xa   : > { %p323_p7 = scmp.ge.s32.totalorder %s440_s18, 1  ;;  %p164_p8 = scmp.lt.s32.totalorder %s440_s18, 3 }
   0xc   : > { %p165_p9 = pnand %p323_p7, %p164_p8 }
   0xd   : > { %p189_p10 = scmp.lt.s32.totalorder (!%p165_p9), %s490_s19, 1  ;;  %s327_s29 = sshll.u32 (!%p165_p9), %s490_s19, 7 }
   0xe   : > { %168 = sbr.rel (%p165_p9) target bundleno = 650 (0x28a), region = 36  ;;  %s259_s8 = scalar_lea.hbm (!%p165_p9), %s569_s4, %s327_s29 }
  0x13   : > { %s190_s27 = scalar_select %p189_p10, %s490_s19, 1  ;;  %v442_v15 = vmov 0   ;;  %v238_v19 = vld [vmem:[%s567_s2] sm:$0xff] }
  0x14   : > { %376 = vset.pattern.permute.xlu1 %v442_v15  ;;  %377 = vset.pattern.permute.xlu0 %v442_v15  ;;  %v221_v22 = vld [vmem:[%s565_s0] sm:$0xff] }
  0x15   : > { %s325_s28 = sshll.u32 %s190_s27, 3  ;;  %v230_v25 = vld [vmem:[%s566_s1] sm:$0xff]  ;;  %s186_s27 = sand.u32 1, %s432_s16  }
  0x16   : > { %s192_s5 = scalar_lea.vmem %s568_s3, %s325_s28  ;;  %s324_s28 = sshll.u32 %s186_s27, 3 }
  0x17   : > { %v193_v0 = vld [vmem:[%s192_s5] sm:$0xff]  ;;  %s188_s30 = scalar_lea.vmem [#allocation2], %s324_s28  ;;  %s248_s9 = scalar_lea.sflag [#allocation3], %s186_s27 }
  0x18   : > { %194 = vadd.xlane.f32.xlu0 %v193_v0  ;;  %s261_s5 = sshll.u32 %s188_s30, 4  ;;  %s262_s5 = int_to_ptr.vmem [resolvable:$true] %s261_s5 }
  0xa1   : > { %v195_v1 = vpop.xlane.xlu0 %194 }
  0xa2   : > { %v196_v2 = vrot.slane %v195_v1, 4 }
  0xa4   : > { %v197_v3 = vadd.f32 %v196_v2, %v195_v1 }
  0xa6   : > { %v198_v4 = vrot.slane %v197_v3, 2 }
  0xa8   : > { %v199_v5 = vadd.f32 %v198_v4, %v197_v3 }
  0xaa   : > { %v200_v6 = vrot.slane %v199_v5, 1 }
  0xac   : > { %v201_v7 = vadd.f32 %v200_v6, %v199_v5 }
  0xae   : > { %330 = vpush %v201_v7 }
  0xdf   : > { %s331_s6 = spop %330 }
  0xe0   : > { %s203_s7 = smul.f32 0.0009765625, %s331_s6 }
  0xe2   : > { %v204_v8 = vstv %s203_s7 }
  0xe3   : > { %v205_v9 = vsub.f32 %v193_v0, %v204_v8 }
  0xe5   : > { %v206_v10 = vmul.f32 %v205_v9, %v205_v9 }
  0xe7   : > { %207 = vadd.xlane.f32.xlu0 %v206_v10 }
  0xfd   : > { %241 = vperm.xlu0 %377, %v238_v19  }
 0x170   : > { %v208_v11 = vpop.xlane.xlu0 %207 }
 0x171   : > { %v209_v12 = vrot.slane %v208_v11, 4 }
 0x173   : > { %v210_v13 = vadd.f32 %v209_v12, %v208_v11 }
 0x175   : > { %v211_v14 = vrot.slane %v210_v13, 2 }
 0x177   : > { %v212_v16 = vadd.f32 %v211_v14, %v210_v13 }
 0x178   : > { %v242_v30 = vpop.permute.xlu0 %241 }
 0x179   : > { %v213_v17 = vrot.slane %v212_v16, 1 }
 0x17b   : > { %v214_v18 = vadd.f32 %v213_v17, %v212_v16 }
 0x17d   : > { %332 = vpush %v214_v18 }
 0x1ae   : > { %s333_s10 = spop %332 }
 0x1af   : > { %s216_s11 = smul.f32 0.0009765625, %s333_s10  ;;  %s380_s10 = scalar_lea.vmem %s262_s5, 128 }
 0x1b0   : > { %p381_p11 = scmp.ne.s32.totalorder %s262_s5, %s380_s10 }
 0x1b1   : > { %s217_s12 = sadd.f32 1e-08, %s216_s11  ;;  %s443_s11 = smov [#allocation2]  }
 0x1b2   : > { %p382_p12 = pnand %p381_p11, %p507_p5 }
 0x1b3   : > { %v218_v20 = vstv %s217_s12  ;;  %s384_s12 = sshll.u32 %s443_s11, 4  ;;  %s385_s12 = int_to_ptr.vmem [resolvable:$false] %s384_s12 }
 0x1b4   : > { %378 = vrsqrt.f32 %v218_v20  ;;  %p383_p13 = pneg %p382_p12  ;;  %s386_s19 = scalar_lea.vmem %s385_s12, 256 }
 0x1b5   : > { %p387_p0 = scmp.lt.s32.totalorder %s262_s5, %s385_s12  ;;  %p388_p1 = scmp.lt.s32.totalorder %s386_s19, %s380_s10 }
 0x1b7   : > { %p389_p2 = por %p388_p1, %p387_p0 }
 0x1b9   : > { %p390_p3 = pnand %p389_p2, %p383_p13 }
 0x1c1   : > { %v379_v21 = vpop.eup %378 }
 0x1c2   : > { %334 = vpush %v379_v21 }
 0x1f3   : > { %s335_s20 = spop %334 }
 0x1f4   : > { %v222_v23 = vstv %s335_s20 }
 0x1f5   : > { %v223_v24 = vmul.f32 %v222_v23, %v221_v22 }
 0x1f7   : > { %226 = vperm.xlu1 %376, %v223_v24  }
 0x1fb   : > { %233 = vperm.xlu1 %376, %v230_v25  }
 0x272   : > { %v227_v26 = vpop.permute.xlu1 %226 }
 0x273   : > { %v229_v27 = vmul.f32 %v227_v26, %v205_v9 }
 0x276   : > { %v234_v28 = vpop.permute.xlu1 %233 }
 0x277   : > { %v236_v29 = vadd.f32 %v234_v28, %v229_v27 }
 0x279   : > { %vm237_vm0 = vcmp.gt.f32.partialorder %v236_v29, 0.0 }
 0x27a   : > { %v244_v31 = vsel %vm237_vm0, 1.0, %v242_v30 }
 0x27b   : > { %v245_v32 = vmul.f32 %v244_v31, %v236_v29 }
 0x27d   : > { %246 = vst [vmem:[%s188_s30] sm:$0xff] %v245_v32 }
 0x27e   : > { %393 = shalt.err (!%p390_p3)
}
 0x27f   : > { %s394_s13 = scalar_lea.hbm %s259_s8, 128  ;;  %s398_s22 = scalar_lea.hbm %s569_s4, 256 }
 0x280   : > { %p395_p4 = scmp.ne.s32.totalorder %s259_s8, %s394_s13  ;;  %p399_p9 = scmp.lt.s32.totalorder %s259_s8, %s569_s4 }
 0x281   : > { %p400_p10 = scmp.lt.s32.totalorder %s398_s22, %s394_s13 }
 0x282   : > { %p396_p7 = pnand %p395_p4, %p507_p5 }
 0x283   : > { %p401_p11 = por %p400_p10, %p399_p9 }
 0x284   : > { %p397_p8 = pneg %p396_p7 }
 0x286   : > { %p402_p12 = pnand %p401_p11, %p397_p8 }
 0x288   : > { %405 = shalt.err (!%p402_p12)
}
 0x289   : > { %336 = dma.vmem_to_hbm [thread:$0]  (%p507_p5), %s262_s5, 128, %s259_s8, %s248_s9  }
 0x28a PF: > { %p342_p13 = scmp.ge.s32.totalorder %s440_s18, 2  ;;  %s273_s28 = sand.u32 1, %s428_s15  }
 0x28b   : > { %s274_s29 = scalar_lea.sflag [#allocation3], %s273_s28 }
 0x28c   : > { %p339_p0 = pnand %p342_p13, %p511_p6 }
 0x28e   : > { %p340_p1 = pneg %p339_p0 }
 0x290   : > { %423 = dma.done.wait (%p340_p1), %s274_s29, 128  }
 0x291   : > { %425 = vsyncadd (%p340_p1), %s274_s29, 4294967168  ;;  %p14_p2 = scmp.ge.s32.totalorder %s494_s21, 4   ;;  %s572_s15 = smov %s432_s16 }
 0x292   : > { %s573_s16 = smov %s436_s17  ;;  %s574_s17 = smov %s505_s24 }
 0x293   : > { %s575_s18 = smov %s494_s21  ;;  %16 = sbr.rel (!%p14_p2) target bundleno = 3 (0x3), region = 71 }
 0x298   :  { %279 = vsyncpa [#allocation3], 1 }
 0x299   :  { %281 = vsyncpa [#allocation3 + $0x1], 1 }

</bundles_post_ra>
